<compile_context>
chip_gen: v7x
topology: tpu7x:2x2x1
jax: 0.10.0
libtpu: 0.0.40
codegen_flags: <defaults>
</compile_context>

<pallas_src>
import math

import jax
import jax.numpy as jnp
from jax.experimental import pallas as pl
from jax.experimental.pallas import tpu as pltpu  # noqa: F401  (per template)

# ---- model dims (consistent with the module's __init__) ---------------------
B = 2            # batch
L = 8            # sequence length
D = 32           # d_model
H = 4            # num_heads
E = D // H       # head dim
F = 64           # dim_feedforward
BL = B * L       # rows processed at once (batch folded into rows)
LN_EPS = 1e-5
NEG = -1e30      # additive mask value (exp underflows to exactly 0.0)

# ---- packed-parameter slab layout (f32, lane width 128, rows mult. of 8) ----
R_WQKV = 0            # rows   0..31 : lanes 0..95 = [Wq|Wk|Wv], lanes 96..127 = Wo
R_W1 = D              # rows  32..63 : lanes 0..63 = W1
R_W2 = 2 * D          # rows  64..127: lanes 0..31 = W2
R_VEC = 2 * D + F     # rows 128..135: bqkv(96), b1(64), bo, ln1_w, ln1_b, b2, ln2_w, ln2_b
R_BIAS = R_VEC + 8    # rows 136..151: (16,16) additive attention mask
SLAB_ROWS = R_BIAS + BL  # 152


def _layer_norm(x, gamma, beta):
    mu = jnp.mean(x, axis=-1, keepdims=True)
    var = jnp.mean((x - mu) ** 2, axis=-1, keepdims=True)
    return (x - mu) * jax.lax.rsqrt(var + LN_EPS) * gamma + beta


def encoder_layer_kernel(x_ref, p_ref, o_ref):
    x = x_ref[...]                                          # (BL, D)

    # --- static sub-views of the packed parameter slab (free) ----------------
    wqkv = p_ref[R_WQKV:R_WQKV + D, 0:3 * D]                # (32, 96)
    wo = p_ref[R_WQKV:R_WQKV + D, 3 * D:4 * D]              # (32, 32)
    w1 = p_ref[R_W1:R_W1 + D, 0:F]                          # (32, 64)
    w2 = p_ref[R_W2:R_W2 + F, 0:D]                          # (64, 32)
    bqkv = p_ref[R_VEC + 0:R_VEC + 1, 0:3 * D]              # (1, 96)
    b1 = p_ref[R_VEC + 1:R_VEC + 2, 0:F]                    # (1, 64)
    bo = p_ref[R_VEC + 2:R_VEC + 3, 0:D]                    # (1, 32)
    ln1_w = p_ref[R_VEC + 3:R_VEC + 4, 0:D]
    ln1_b = p_ref[R_VEC + 4:R_VEC + 5, 0:D]
    b2 = p_ref[R_VEC + 5:R_VEC + 6, 0:D]
    ln2_w = p_ref[R_VEC + 6:R_VEC + 7, 0:D]
    ln2_b = p_ref[R_VEC + 7:R_VEC + 8, 0:D]
    bias = p_ref[R_BIAS:R_BIAS + BL, 0:BL]                  # (BL, BL) additive mask

    # --- QKV: one dense (16,32)x(32,96) MXU matmul ----------------------------
    qkv = jnp.dot(x, wqkv, preferred_element_type=jnp.float32) + bqkv   # (BL, 3D)
    # Cheap relayout to head-major (3H, BL, E); leading-dim slices split q/k/v.
    qkv_h = jnp.transpose(qkv.reshape(BL, 3 * H, E), (1, 0, 2))         # (12, BL, E)
    q = qkv_h[0:H]                                                      # (H, BL, E)
    k = qkv_h[H:2 * H]
    v = qkv_h[2 * H:3 * H]

    # --- scaled dot-product attention, heads batched on the leading dim ------
    s = jax.lax.dot_general(
        q, k, dimension_numbers=(((2,), (2,)), ((0,), (0,))),
        preferred_element_type=jnp.float32) * (1.0 / math.sqrt(E))      # (H, BL, BL)
    s = s + bias[None]                      # causal + same-batch additive mask
    # Max-subtraction kept for numerical safety (XLU reduce, off the VALU slot).
    s = s - jnp.max(s, axis=-1, keepdims=True)
    p = jnp.exp(s)
    # Every row has >= 1 valid entry (its own position), so the sum is > 0.
    p = p * pl.reciprocal(jnp.sum(p, axis=-1, keepdims=True), approx=True)
    ctx = jax.lax.dot_general(
        p, v, dimension_numbers=(((2,), (1,)), ((0,), (0,))),
        preferred_element_type=jnp.float32)                             # (H, BL, E)

    # --- output projection: relayout heads back to lanes, ONE dense matmul ---
    ctx2 = jnp.transpose(ctx, (1, 0, 2)).reshape(BL, D)                 # (BL, D)
    attn_out = jnp.dot(ctx2, wo, preferred_element_type=jnp.float32) + bo

    # --- residual + norm1 (dropout == identity in eval mode) -----------------
    n1 = _layer_norm(x + attn_out, ln1_w, ln1_b)

    # --- feed-forward (relu) + residual + norm2 -------------------------------
    ff = jnp.dot(n1, w1, preferred_element_type=jnp.float32) + b1
    ff = jnp.maximum(ff, 0.0)
    ff = jnp.dot(ff, w2, preferred_element_type=jnp.float32) + b2
    o_ref[...] = _layer_norm(n1 + ff, ln2_w, ln2_b).astype(o_ref.dtype)


def _attn_bias():
    """Additive score mask over the (BL, BL) flattened row space.

    A key/query pair is valid (bias 0) iff it belongs to the same batch element
    AND key position <= query position -- i.e. the TriangularCausalMask that
    FullAttention (mask_flag=True, attn_mask=None) applies, with batches kept
    independent after folding batch into the row dimension."""
    n = jnp.arange(BL)
    row, col = n[:, None], n[None, :]
    valid = ((row // L) == (col // L)) & (col <= row)
    return jnp.where(valid, 0.0, NEG).astype(jnp.float32)


def pack_params(params):
    """One-time host-side packing of all parameters + attention mask into a
    single lane-dense (SLAB_ROWS, 128) f32 slab.  Runs once at init, NOT in the
    per-call jitted forward path."""
    (wq, bq, wk, bk, wv, bv, wo, bo,
     ln1_w, ln1_b, w1, b1, w2, b2, ln2_w, ln2_b) = params
    slab = jnp.zeros((SLAB_ROWS, 128), jnp.float32)
    slab = slab.at[R_WQKV:R_WQKV + D, 0:3 * D].set(
        jnp.concatenate([wq, wk, wv], axis=1))
    slab = slab.at[R_WQKV:R_WQKV + D, 3 * D:4 * D].set(wo)
    slab = slab.at[R_W1:R_W1 + D, 0:F].set(w1)
    slab = slab.at[R_W2:R_W2 + F, 0:D].set(w2)
    vecs = [jnp.concatenate([bq, bk, bv]),            # (96,)
            b1,                                       # (64,)
            bo, ln1_w, ln1_b, b2, ln2_w, ln2_b]       # (32,) each
    for i, vec in enumerate(vecs):
        slab = slab.at[R_VEC + i, 0:vec.shape[0]].set(vec)
    slab = slab.at[R_BIAS:R_BIAS + BL, 0:BL].set(_attn_bias())
    return slab


@jax.jit
def encoder_layer(x, slab):
    # No grid: single invocation, x + parameter slab resident whole in VMEM
    # (~85 KB << VMEM on v5e/v6e/v7x), exactly two input DMAs, no pipelining
    # overhead.  Single-TC by design even on v7x (overhead-bound at 16 rows).
    out2d = pl.pallas_call(
        encoder_layer_kernel,
        out_shape=jax.ShapeDtypeStruct((BL, D), jnp.float32),
    )(x.reshape(BL, D), slab)
    return out2d.reshape(B, L, D)


# --- pure-JAX reference (for a silent correctness check) ---------------------
def encoder_layer_ref(x, params):
    (wq, bq, wk, bk, wv, bv, wo, bo,
     ln1_w, ln1_b, w1, b1, w2, b2, ln2_w, ln2_b) = params
    q = (x @ wq + bq).reshape(B, L, H, E)
    k = (x @ wk + bk).reshape(B, L, H, E)
    v = (x @ wv + bv).reshape(B, L, H, E)
    scores = jnp.einsum("blhe,bshe->bhls", q, k) / math.sqrt(E)
    causal = jnp.tril(jnp.ones((L, L), dtype=bool))
    scores = jnp.where(causal[None, None], scores, NEG)
    a = jax.nn.softmax(scores, axis=-1)
    o = jnp.einsum("bhls,bshe->blhe", a, v).reshape(B, L, D)
    o = o @ wo + bo
    n1 = _layer_norm(x + o, ln1_w, ln1_b)
    ff = jnp.maximum(n1 @ w1 + b1, 0.0) @ w2 + b2
    return _layer_norm(n1 + ff, ln2_w, ln2_b)


def init_params(key):
    keys = jax.random.split(key, 16)
    s = 0.1
    wq = jax.random.normal(keys[0], (D, D), jnp.float32) * s
    bq = jax.random.normal(keys[1], (D,), jnp.float32) * s
    wk = jax.random.normal(keys[2], (D, D), jnp.float32) * s
    bk = jax.random.normal(keys[3], (D,), jnp.float32) * s
    wv = jax.random.normal(keys[4], (D, D), jnp.float32) * s
    bv = jax.random.normal(keys[5], (D,), jnp.float32) * s
    wo = jax.random.normal(keys[6], (D, D), jnp.float32) * s
    bo = jax.random.normal(keys[7], (D,), jnp.float32) * s
    ln1_w = jnp.ones((D,), jnp.float32)
    ln1_b = jnp.zeros((D,), jnp.float32)
    w1 = jax.random.normal(keys[8], (D, F), jnp.float32) * s
    b1 = jax.random.normal(keys[9], (F,), jnp.float32) * s
    w2 = jax.random.normal(keys[10], (F, D), jnp.float32) * s
    b2 = jax.random.normal(keys[11], (D,), jnp.float32) * s
    ln2_w = jnp.ones((D,), jnp.float32)
    ln2_b = jnp.zeros((D,), jnp.float32)
    return (wq, bq, wk, bk, wv, bv, wo, bo,
            ln1_w, ln1_b, w1, b1, w2, b2, ln2_w, ln2_b)


if __name__ == "__main__":
    key = jax.random.PRNGKey(0)
    k_x, k_p = jax.random.split(key)
    x = jax.random.normal(k_x, (B, L, D), jnp.float32)
    params = init_params(k_p)

    # One-time parameter packing (outside the jitted per-call forward path).
    slab = jax.block_until_ready(pack_params(params))

    out = jax.block_until_ready(encoder_layer(x, slab))
    ref = encoder_layer_ref(x, params)

    # Tolerance covers the EUP approximate-reciprocal softmax normalization;
    # any structural/layout bug would produce errors orders of magnitude larger.
    if not bool(jnp.allclose(out, ref, atol=5e-3, rtol=5e-3)):
        raise AssertionError("Pallas kernel output does not match JAX reference")

    print("KERNEL_OK")
</pallas_src>

<mosaic_0001>
module attributes {stable_mosaic.version = 11 : i64} {
  func.func @encoder_layer_kernel(%arg0: memref<16x32xf32, #tpu.memory_space<vmem>>, %arg1: memref<152x128xf32, #tpu.memory_space<vmem>>, %arg2: memref<16x32xf32, #tpu.memory_space<vmem>>) attributes {dimension_semantics = [], scalar_prefetch = 0 : i64, scratch_operands = 0 : i64, tpu.core_type = #tpu.core_type<tc>} {
    %c0 = arith.constant 0 : index
    %c0_0 = arith.constant 0 : index
    %0 = vector.load %arg0[%c0, %c0_0] : memref<16x32xf32, #tpu.memory_space<vmem>>, vector<16x32xf32>
    %c0_1 = arith.constant 0 : index
    %c0_2 = arith.constant 0 : index
    %1 = vector.load %arg1[%c0_1, %c0_2] : memref<152x128xf32, #tpu.memory_space<vmem>>, vector<32x96xf32>
    %c0_3 = arith.constant 0 : index
    %c96 = arith.constant 96 : index
    %2 = vector.load %arg1[%c0_3, %c96] : memref<152x128xf32, #tpu.memory_space<vmem>>, vector<32x32xf32>
    %c32 = arith.constant 32 : index
    %c0_4 = arith.constant 0 : index
    %3 = vector.load %arg1[%c32, %c0_4] : memref<152x128xf32, #tpu.memory_space<vmem>>, vector<32x64xf32>
    %c64 = arith.constant 64 : index
    %c0_5 = arith.constant 0 : index
    %4 = vector.load %arg1[%c64, %c0_5] : memref<152x128xf32, #tpu.memory_space<vmem>>, vector<64x32xf32>
    %c128 = arith.constant 128 : index
    %c0_6 = arith.constant 0 : index
    %5 = vector.load %arg1[%c128, %c0_6] : memref<152x128xf32, #tpu.memory_space<vmem>>, vector<1x96xf32>
    %c129 = arith.constant 129 : index
    %c0_7 = arith.constant 0 : index
    %6 = vector.load %arg1[%c129, %c0_7] : memref<152x128xf32, #tpu.memory_space<vmem>>, vector<1x64xf32>
    %c130 = arith.constant 130 : index
    %c0_8 = arith.constant 0 : index
    %7 = vector.load %arg1[%c130, %c0_8] : memref<152x128xf32, #tpu.memory_space<vmem>>, vector<1x32xf32>
    %c131 = arith.constant 131 : index
    %c0_9 = arith.constant 0 : index
    %8 = vector.load %arg1[%c131, %c0_9] : memref<152x128xf32, #tpu.memory_space<vmem>>, vector<1x32xf32>
    %c132 = arith.constant 132 : index
    %c0_10 = arith.constant 0 : index
    %9 = vector.load %arg1[%c132, %c0_10] : memref<152x128xf32, #tpu.memory_space<vmem>>, vector<1x32xf32>
    %c133 = arith.constant 133 : index
    %c0_11 = arith.constant 0 : index
    %10 = vector.load %arg1[%c133, %c0_11] : memref<152x128xf32, #tpu.memory_space<vmem>>, vector<1x32xf32>
    %c134 = arith.constant 134 : index
    %c0_12 = arith.constant 0 : index
    %11 = vector.load %arg1[%c134, %c0_12] : memref<152x128xf32, #tpu.memory_space<vmem>>, vector<1x32xf32>
    %c135 = arith.constant 135 : index
    %c0_13 = arith.constant 0 : index
    %12 = vector.load %arg1[%c135, %c0_13] : memref<152x128xf32, #tpu.memory_space<vmem>>, vector<1x32xf32>
    %c136 = arith.constant 136 : index
    %c0_14 = arith.constant 0 : index
    %13 = vector.load %arg1[%c136, %c0_14] : memref<152x128xf32, #tpu.memory_space<vmem>>, vector<16x16xf32>
    %cst = arith.constant dense<0.000000e+00> : vector<16x96xf32>
    %14 = tpu.matmul %0, %1, %cst {dimension_numbers = #tpu.dot_dimension_numbers<[1], [0], [0], [1], [0, 0, 1, 1], [], []>} : vector<16x32xf32>, vector<32x96xf32>, vector<16x96xf32> -> vector<16x96xf32>
    %15 = vector.broadcast %5 : vector<1x96xf32> to vector<16x96xf32>
    %16 = arith.addf %14, %15 : vector<16x96xf32>
    %17 = vector.shape_cast %16 : vector<16x96xf32> to vector<16x12x8xf32>
    %18 = tpu.transpose %17, [1, 0, 2] : vector<16x12x8xf32> -> vector<12x16x8xf32>
    %19 = vector.extract_strided_slice %18 {offsets = [0, 0, 0], sizes = [4, 16, 8], strides = [1, 1, 1]} : vector<12x16x8xf32> to vector<4x16x8xf32>
    %20 = vector.extract_strided_slice %18 {offsets = [4, 0, 0], sizes = [4, 16, 8], strides = [1, 1, 1]} : vector<12x16x8xf32> to vector<4x16x8xf32>
    %21 = vector.extract_strided_slice %18 {offsets = [8, 0, 0], sizes = [4, 16, 8], strides = [1, 1, 1]} : vector<12x16x8xf32> to vector<4x16x8xf32>
    %cst_15 = arith.constant dense<0.000000e+00> : vector<4x16x16xf32>
    %22 = tpu.matmul %19, %20, %cst_15 {dimension_numbers = #tpu.dot_dimension_numbers<[2], [2], [1], [1], [0, 0, 0, 1, 1, 1], [0], [0]>} : vector<4x16x8xf32>, vector<4x16x8xf32>, vector<4x16x16xf32> -> vector<4x16x16xf32>
    %cst_16 = arith.constant 0.353553385 : f32
    %23 = vector.broadcast %cst_16 : f32 to vector<4x16x16xf32>
    %24 = arith.mulf %22, %23 : vector<4x16x16xf32>
    %25 = vector.shape_cast %13 : vector<16x16xf32> to vector<1x16x16xf32>
    %26 = vector.broadcast %25 : vector<1x16x16xf32> to vector<4x16x16xf32>
    %27 = arith.addf %24, %26 : vector<4x16x16xf32>
    %cst_17 = arith.constant dense<0xFF800000> : vector<4x16xf32>
    %28 = vector.multi_reduction <maximumf>, %27, %cst_17 [2] : vector<4x16x16xf32> to vector<4x16xf32>
    %29 = vector.shape_cast %28 : vector<4x16xf32> to vector<4x16x1xf32>
    %30 = vector.broadcast %29 : vector<4x16x1xf32> to vector<4x16x16xf32>
    %31 = arith.subf %27, %30 : vector<4x16x16xf32>
    %32 = math.exp %31 : vector<4x16x16xf32>
    %cst_18 = arith.constant dense<0.000000e+00> : vector<4x16xf32>
    %33 = vector.multi_reduction <add>, %32, %cst_18 [2] : vector<4x16x16xf32> to vector<4x16xf32>
    %34 = vector.shape_cast %33 : vector<4x16xf32> to vector<4x16x1xf32>
    %35 = tpu.reciprocal %34 {approx = true} : vector<4x16x1xf32> -> vector<4x16x1xf32>
    %36 = vector.broadcast %35 : vector<4x16x1xf32> to vector<4x16x16xf32>
    %37 = arith.mulf %32, %36 : vector<4x16x16xf32>
    %cst_19 = arith.constant dense<0.000000e+00> : vector<4x16x8xf32>
    %38 = tpu.matmul %37, %21, %cst_19 {dimension_numbers = #tpu.dot_dimension_numbers<[2], [1], [1], [2], [0, 0, 0, 1, 1, 2], [0], [0]>} : vector<4x16x16xf32>, vector<4x16x8xf32>, vector<4x16x8xf32> -> vector<4x16x8xf32>
    %39 = tpu.transpose %38, [1, 0, 2] : vector<4x16x8xf32> -> vector<16x4x8xf32>
    %40 = vector.shape_cast %39 : vector<16x4x8xf32> to vector<16x32xf32>
    %cst_20 = arith.constant dense<0.000000e+00> : vector<16x32xf32>
    %41 = tpu.matmul %40, %2, %cst_20 {dimension_numbers = #tpu.dot_dimension_numbers<[1], [0], [0], [1], [0, 0, 1, 1], [], []>} : vector<16x32xf32>, vector<32x32xf32>, vector<16x32xf32> -> vector<16x32xf32>
    %42 = vector.broadcast %7 : vector<1x32xf32> to vector<16x32xf32>
    %43 = arith.addf %41, %42 : vector<16x32xf32>
    %44 = arith.addf %0, %43 : vector<16x32xf32>
    %cst_21 = arith.constant dense<0.000000e+00> : vector<16xf32>
    %45 = vector.multi_reduction <add>, %44, %cst_21 [1] : vector<16x32xf32> to vector<16xf32>
    %46 = vector.shape_cast %45 : vector<16xf32> to vector<16x1xf32>
    %cst_22 = arith.constant 3.200000e+01 : f32
    %47 = vector.broadcast %cst_22 : f32 to vector<16x1xf32>
    %48 = arith.divf %46, %47 : vector<16x1xf32>
    %49 = vector.broadcast %48 : vector<16x1xf32> to vector<16x32xf32>
    %50 = arith.subf %44, %49 : vector<16x32xf32>
    %51 = arith.mulf %50, %50 : vector<16x32xf32>
    %cst_23 = arith.constant dense<0.000000e+00> : vector<16xf32>
    %52 = vector.multi_reduction <add>, %51, %cst_23 [1] : vector<16x32xf32> to vector<16xf32>
    %53 = vector.shape_cast %52 : vector<16xf32> to vector<16x1xf32>
    %cst_24 = arith.constant 3.200000e+01 : f32
    %54 = vector.broadcast %cst_24 : f32 to vector<16x1xf32>
    %55 = arith.divf %53, %54 : vector<16x1xf32>
    %56 = vector.broadcast %48 : vector<16x1xf32> to vector<16x32xf32>
    %57 = arith.subf %44, %56 : vector<16x32xf32>
    %cst_25 = arith.constant 9.99999974E-6 : f32
    %58 = vector.broadcast %cst_25 : f32 to vector<16x1xf32>
    %59 = arith.addf %55, %58 : vector<16x1xf32>
    %60 = math.rsqrt %59 : vector<16x1xf32>
    %61 = vector.broadcast %60 : vector<16x1xf32> to vector<16x32xf32>
    %62 = arith.mulf %57, %61 : vector<16x32xf32>
    %63 = vector.broadcast %8 : vector<1x32xf32> to vector<16x32xf32>
    %64 = arith.mulf %62, %63 : vector<16x32xf32>
    %65 = vector.broadcast %9 : vector<1x32xf32> to vector<16x32xf32>
    %66 = arith.addf %64, %65 : vector<16x32xf32>
    %cst_26 = arith.constant dense<0.000000e+00> : vector<16x64xf32>
    %67 = tpu.matmul %66, %3, %cst_26 {dimension_numbers = #tpu.dot_dimension_numbers<[1], [0], [0], [1], [0, 0, 1, 1], [], []>} : vector<16x32xf32>, vector<32x64xf32>, vector<16x64xf32> -> vector<16x64xf32>
    %68 = vector.broadcast %6 : vector<1x64xf32> to vector<16x64xf32>
    %69 = arith.addf %67, %68 : vector<16x64xf32>
    %cst_27 = arith.constant 0.000000e+00 : f32
    %70 = vector.broadcast %cst_27 : f32 to vector<16x64xf32>
    %71 = arith.maximumf %69, %70 : vector<16x64xf32>
    %cst_28 = arith.constant dense<0.000000e+00> : vector<16x32xf32>
    %72 = tpu.matmul %71, %4, %cst_28 {dimension_numbers = #tpu.dot_dimension_numbers<[1], [0], [0], [1], [0, 0, 1, 1], [], []>} : vector<16x64xf32>, vector<64x32xf32>, vector<16x32xf32> -> vector<16x32xf32>
    %73 = vector.broadcast %10 : vector<1x32xf32> to vector<16x32xf32>
    %74 = arith.addf %72, %73 : vector<16x32xf32>
    %75 = arith.addf %66, %74 : vector<16x32xf32>
    %cst_29 = arith.constant dense<0.000000e+00> : vector<16xf32>
    %76 = vector.multi_reduction <add>, %75, %cst_29 [1] : vector<16x32xf32> to vector<16xf32>
    %77 = vector.shape_cast %76 : vector<16xf32> to vector<16x1xf32>
    %cst_30 = arith.constant 3.200000e+01 : f32
    %78 = vector.broadcast %cst_30 : f32 to vector<16x1xf32>
    %79 = arith.divf %77, %78 : vector<16x1xf32>
    %80 = vector.broadcast %79 : vector<16x1xf32> to vector<16x32xf32>
    %81 = arith.subf %75, %80 : vector<16x32xf32>
    %82 = arith.mulf %81, %81 : vector<16x32xf32>
    %cst_31 = arith.constant dense<0.000000e+00> : vector<16xf32>
    %83 = vector.multi_reduction <add>, %82, %cst_31 [1] : vector<16x32xf32> to vector<16xf32>
    %84 = vector.shape_cast %83 : vector<16xf32> to vector<16x1xf32>
    %cst_32 = arith.constant 3.200000e+01 : f32
    %85 = vector.broadcast %cst_32 : f32 to vector<16x1xf32>
    %86 = arith.divf %84, %85 : vector<16x1xf32>
    %87 = vector.broadcast %79 : vector<16x1xf32> to vector<16x32xf32>
    %88 = arith.subf %75, %87 : vector<16x32xf32>
    %cst_33 = arith.constant 9.99999974E-6 : f32
    %89 = vector.broadcast %cst_33 : f32 to vector<16x1xf32>
    %90 = arith.addf %86, %89 : vector<16x1xf32>
    %91 = math.rsqrt %90 : vector<16x1xf32>
    %92 = vector.broadcast %91 : vector<16x1xf32> to vector<16x32xf32>
    %93 = arith.mulf %88, %92 : vector<16x32xf32>
    %94 = vector.broadcast %11 : vector<1x32xf32> to vector<16x32xf32>
    %95 = arith.mulf %93, %94 : vector<16x32xf32>
    %96 = vector.broadcast %12 : vector<1x32xf32> to vector<16x32xf32>
    %97 = arith.addf %95, %96 : vector<16x32xf32>
    %c0_34 = arith.constant 0 : index
    %c0_35 = arith.constant 0 : index
    %98 = vector.load %arg2[%c0_34, %c0_35] : memref<16x32xf32, #tpu.memory_space<vmem>>, vector<16x32xf32>
    tpu.vector_store %arg2[%c0_34, %c0_35], %97 {strides = array<i32>} : memref<16x32xf32, #tpu.memory_space<vmem>>, vector<16x32xf32>,
    return
  }
}

</mosaic_0001>

<bundles_post_ra>
// kernel: encoder_layer.1
= control target key start
LH: loop header
LB: loop body
LE: loop exit
PB: predicated region body
PF: predicated region fallthrough
CT: control target
= control target key end

     0   :  { %7 = vsyncpa [#allocation3], 0  ;;  %s3383_s0 = inlined_call_operand.hbm [shape: f32[16,32], index: 0, kind: input, shape index: {}]   ;;  %s3384_s1 = inlined_call_operand.hbm [shape: f32[152,128], index: 1, kind: input, shape index: {}]   ;;  %s3385_s2 = inlined_call_operand.hbm [shape: f32[16,32], index: 2, kind: output, shape index: {}]  }
   0x1   :  { %8 = vsyncpa [#allocation6], 0 }
   0x2   :  { %9 = vsyncpa [#allocation4], 0  ;;  %s2951_s9 = smov [#allocation2]   ;;  %s2879_s13 = scalar_lea.hbm %s3383_s0, 256 }
   0x3   :  { %s15_s10 = sshll.u32 %s2951_s9, 4  ;;  %p2880_p0 = scmp.ne.s32.totalorder %s3383_s0, %s2879_s13  ;;  %s16_s10 = int_to_ptr.vmem [resolvable:$true] %s15_s10 }
   0x4   :  { %p2883_p1 = scmp.lt.u32.totalorder %s2879_s13, %s3383_s0 }
   0x6   :  { %p2885_p2 = pnand %p2883_p1, %p2880_p0 }
   0x8   :  { %2888 = shalt.err (!%p2885_p2)
}
   0x9   :  { %s2889_s18 = scalar_lea.vmem %s16_s10, 256  ;;  %p2894_p4 = scmp.lt.s32.totalorder %s16_s10, %s16_s10 }
   0xa   :  { %p2890_p3 = scmp.ne.s32.totalorder %s16_s10, %s2889_s18  ;;  %p2895_p5 = scmp.lt.s32.totalorder %s2889_s18, %s2889_s18 }
   0xc   :  { %p2896_p6 = por %p2895_p5, %p2894_p4 }
   0xe   :  { %p2897_p7 = pnand %p2896_p6, %p2890_p3 }
  0x10   :  { %2900 = shalt.err (!%p2897_p7)
}
  0x11   :  { %s2952_s19 = smov 128   ;;  %s2953_s20 = smov 8  }
  0x12   :  { %21 = dma.hbm_to_vmem [thread:$0]  %s3383_s0, 256, %s16_s10, [#allocation3], %s2952_s19, %s2952_s19, %s2953_s20  }
  0x13   :  { %s2954_s23 = smov [#allocation5]   ;;  %s2901_s27 = scalar_lea.hbm %s3384_s1, 2432 }
  0x14   :  { %s27_s24 = sshll.u32 %s2954_s23, 4  ;;  %p2902_p8 = scmp.ne.s32.totalorder %s3384_s1, %s2901_s27  ;;  %s28_s24 = int_to_ptr.vmem [resolvable:$true] %s27_s24 }
  0x15   :  { %p2905_p9 = scmp.lt.u32.totalorder %s2901_s27, %s3384_s1 }
  0x17   :  { %p2907_p10 = pnand %p2905_p9, %p2902_p8 }
  0x19   :  { %2910 = shalt.err (!%p2907_p10)
}
  0x1a   :  { %s2911_s4 = scalar_lea.vmem %s28_s24, 2432  ;;  %p2916_p12 = scmp.lt.s32.totalorder %s28_s24, %s28_s24 }
  0x1b   :  { %p2912_p11 = scmp.ne.s32.totalorder %s28_s24, %s2911_s4  ;;  %p2917_p13 = scmp.lt.s32.totalorder %s2911_s4, %s2911_s4 }
  0x1d   :  { %p2918_p0 = por %p2917_p13, %p2916_p12 }
  0x1f   :  { %p2919_p1 = pnand %p2918_p0, %p2912_p11 }
  0x21   :  { %2922 = shalt.err (!%p2919_p1)
}
  0x22   :  { %33 = dma.hbm_to_vmem [thread:$0]  %s3384_s1, 2432, %s28_s24, [#allocation6], %s2952_s19, %s2952_s19, %s2953_s20  }
  0x23   :  { %2945 = dma.done.wait [#allocation3], 256  }
  0x24   :  { %2946 = vsyncadd [#allocation3], 4294967040 }
  0x25   :  { %2947 = dma.done.wait [#allocation6], 2432  }
  0x26   :  { %2948 = vsyncadd [#allocation6], 4294964864  ;;  %vm72_vm0 = vcmask 261120   ;;  %v3017_v0 = vld [vmem:[#allocation5] sm:$0xff]  ;;  %v3019_v1 = vld [vmem:[#allocation5 + $0x8] sm:$0xff]  ;;  %s2955_s1 = smov 88   ;;  %v227_v16 = vlaneseq }
  0x27   :  { %v3021_v2 = vld [vmem:[#allocation5 + $0x10] sm:$0xff]  ;;  %v2827_v3 = vpack.i.bf16 %v3019_v1, %v3017_v0  ;;  %v2726_v4 = vpack.c.bf16 %v3019_v1, %v3017_v0  ;;  %v3027_v5 = vld [vmem:[#allocation5 + $0x18] sm:$0xff]  ;;  %v2494_v9 = vld [vmem:[#allocation5 + $0x80] ss:$0 sm:$0xff]  ;;  %s2956_s6 = smov 96   ;;  %s2957_s7 = smov 80  }
  0x28   :  { %v40_v6 = vld [vmem:[#allocation2] sm:$0xff]  ;;  %v2730_v7 = vpack.c.bf16 %v3027_v5, %v3021_v2  ;;  %v41_v8 = vld [vmem:[#allocation2 + $0x8] sm:$0xff]  ;;  %s2958_s8 = smov 72   ;;  %s2959_s9 = smov 120   ;;  %v2962_v14 = vmov 1983009808  }
  0x29   :  { %2626 = vmatprep.mubr.msk.f32.mxu1 %vm72_vm0, %v40_v6  ;;  %2727 = vmatprep.subr.bf16.mxu1 %v2726_v4  ;;  %s2960_s10 = smov 112   ;;  %s2961_s11 = smov 104   ;;  %v225_v15 = vunpack.c.l.s4 %v2962_v14  ;;  %v2963_v19 = vmov 1934713408   ;;  %v228_v22 = vshrl.u32 %v227_v16, 7  ;;  %vm1038_vm1 = vcmask 64512  }
  0x2a   :  { %2729 = vmatpush3.bf16.msra.mxu1 %v2726_v4  ;;  %v289_v20 = vunpack.c.l.s4 %v2963_v19  ;;  %vm3143_vm2 = vmpackc.low %vm1038_vm1, %vm1038_vm1  ;;  %vm1403_vm3 = vcmask 130048   ;;  %s2964_s12 = smov 64   ;;  %s2965_s13 = smov 56   ;;  %vm2116_vm4 = vcmask 195584   ;;  %vm2352_vm5 = vcmask 523264  }
  0x2b   :  { %2731 = vmatprep.subr.bf16.mxu1 %v2730_v7  ;;  %v226_v21 = vunpack.c.0.s8 %v225_v15  ;;  %s2966_s14 = smov 48   ;;  %s2967_s15 = smov 40  }
  0x2c   :  { %v290_v25 = vunpack.c.0.s8 %v289_v20  ;;  %s2968_s16 = smov 32   ;;  %s2969_s17 = smov 16  }
  0x2d   :  { %v3051_v26 = vsub.s32 %v226_v21, %v228_v22  ;;  %s2970_s18 = smov 24   ;;  %s2971_s21 = smov [#allocation7]  }
  0x2e   :  { %2733 = vmatpush3.bf16.msra.mxu1 %v2730_v7  ;;  %v3053_v33 = vsub.s32 %v290_v25, %v228_v22  ;;  %s2481_s22 = sshll.u32 %s2971_s21, 4  ;;  %s2482_s22 = int_to_ptr.vmem [resolvable:$true] %s2481_s22 }
  0x2f   :  { %s2923_s23 = scalar_lea.vmem %s2482_s22, 256  ;;  %p2928_p3 = scmp.lt.s32.totalorder %s2482_s22, %s2482_s22 }
  0x30   :  { %p2924_p2 = scmp.ne.s32.totalorder %s2482_s22, %s2923_s23  ;;  %p2929_p4 = scmp.lt.s32.totalorder %s2923_s23, %s2923_s23 }
  0x31   :  { %2627 = vmatmul.mubr.msk.f32.vlgmr.msra.gmra.mrb[0].mxu1 %vm72_vm0, %v41_v8 }
  0x32   :  { %p2930_p5 = por %p2929_p4, %p2928_p3 }
  0x34   :  { %p2931_p6 = pnand %p2930_p5, %p2924_p2 }
 0x104   :  { %v2628_v10 = vpop.f32.mrb[0].mxu1 }
 0x105   :  { %v3033_v11 = vadd.f32 %v2628_v10, %v2494_v9  ;;  %v145_v12 = vpop.f32.mrb[1].mxu1 }
 0x106   :  { %v3037_v13 = vadd.f32 %v2494_v9, %v145_v12 }
 0x107   :  { %182 = vrot.lane.b32.xlu1 %v3033_v11, %s2955_s1  ;;  %176 = vrot.lane.b32.xlu0 %v3033_v11, %s2956_s6 }
 0x10b   :  { %188 = vrot.lane.b32.xlu1 %v3033_v11, %s2957_s7  ;;  %174 = vrot.lane.b32.xlu0 %v3037_v13, %s2956_s6 }
 0x10f   :  { %194 = vrot.lane.b32.xlu1 %v3033_v11, %s2958_s8  ;;  %186 = vrot.lane.b32.xlu0 %v3037_v13, %s2957_s7 }
 0x113   :  { %180 = vrot.lane.b32.xlu1 %v3037_v13, %s2955_s1  ;;  %192 = vrot.lane.b32.xlu0 %v3037_v13, %s2958_s8 }
 0x117   :  { %158 = vrot.lane.b32.xlu1 %v3033_v11, %s2959_s9  ;;  %156 = vrot.lane.b32.xlu0 %v3037_v13, %s2959_s9 }
 0x11b   :  { %162 = vrot.lane.b32.xlu1 %v3037_v13, %s2960_s10  ;;  %168 = vrot.lane.b32.xlu0 %v3037_v13, %s2961_s11 }
 0x11f   :  { %170 = vrot.lane.b32.xlu1 %v3033_v11, %s2961_s11  ;;  %164 = vrot.lane.b32.xlu0 %v3033_v11, %s2960_s10 }
 0x179   :  { %v183_v17 = vpop.permute.xlu1 %182  ;;  %v177_v18 = vpop.permute.xlu0 %176 }
 0x17d   :  { %v189_v23 = vpop.permute.xlu1 %188  ;;  %v175_v24 = vpop.permute.xlu0 %174 }
 0x17e   :  { %v458_v27 = vcombine.low %v177_v18, %v189_v23  ;;  %v459_v28 = vcombine.high %v177_v18, %v189_v23 }
 0x180   :  { %v466_v34 = vrot.slane %v458_v27, %v3051_v26  ;;  %v473_v35 = vrot.slane %v459_v28, %v3051_v26 }
 0x181   :  { %v195_v29 = vpop.permute.xlu1 %194  ;;  %v187_v30 = vpop.permute.xlu0 %186 }
 0x182   :  { %v474_v31 = vcombine.low %v183_v17, %v195_v29  ;;  %v475_v32 = vcombine.high %v183_v17, %v195_v29  ;;  %v254_v38 = vcombine.low %v175_v24, %v187_v30  ;;  %v255_v39 = vcombine.high %v175_v24, %v187_v30 }
 0x184   :  { %v482_v36 = vrot.slane %v474_v31, %v3051_v26  ;;  %v489_v37 = vrot.slane %v475_v32, %v3051_v26  ;;  %v262_v52 = vrot.slane %v254_v38, %v3051_v26  ;;  %v269_v53 = vrot.slane %v255_v39, %v3051_v26 }
 0x185   :  { %v181_v40 = vpop.permute.xlu1 %180  ;;  %v193_v41 = vpop.permute.xlu0 %192 }
 0x186   :  { %v522_v42 = vcombine.low %v466_v34, %v482_v36  ;;  %v523_v43 = vcombine.high %v466_v34, %v482_v36  ;;  %v538_v44 = vcombine.low %v473_v35, %v489_v37  ;;  %v539_v45 = vcombine.high %v473_v35, %v489_v37 }
 0x187   :  { %v270_v46 = vcombine.low %v181_v40, %v193_v41  ;;  %v271_v47 = vcombine.high %v181_v40, %v193_v41 }
 0x188   :  { %v530_v48 = vrot.slane %v522_v42, %v3053_v33  ;;  %v537_v49 = vrot.slane %v523_v43, %v3053_v33  ;;  %v546_v50 = vrot.slane %v538_v44, %v3053_v33  ;;  %v553_v51 = vrot.slane %v539_v45, %v3053_v33 }
 0x189   :  { %v278_v54 = vrot.slane %v270_v46, %v3051_v26  ;;  %v285_v55 = vrot.slane %v271_v47, %v3051_v26  ;;  %v159_v56 = vpop.permute.xlu1 %158  ;;  %v157_v57 = vpop.permute.xlu0 %156 }
 0x18a   :  { %v2506_v58 = vcombine.low %v530_v48, %v537_v49  ;;  %v2508_v59 = vcombine.high %v530_v48, %v537_v49  ;;  %v2510_v60 = vcombine.low %v546_v50, %v553_v51  ;;  %v2512_v61 = vcombine.high %v546_v50, %v553_v51 }
 0x18b   :  { %v318_v62 = vcombine.low %v262_v52, %v278_v54  ;;  %v319_v63 = vcombine.high %v262_v52, %v278_v54  ;;  %v334_v4 = vcombine.low %v269_v53, %v285_v55  ;;  %v335_v6 = vcombine.high %v269_v53, %v285_v55 }
 0x18c   :  { %v3068_v7 = vrot.slane %v2506_v58, %v3051_v26  ;;  %v3071_v8 = vrot.slane %v2508_v59, %v3051_v26  ;;  %v3074_v9 = vrot.slane %v2510_v60, %v3051_v26  ;;  %v3077_v10 = vrot.slane %v2512_v61, %v3051_v26 }
 0x18d   :  { %v326_v12 = vrot.slane %v318_v62, %v3053_v33  ;;  %v333_v14 = vrot.slane %v319_v63, %v3053_v33  ;;  %v342_v15 = vrot.slane %v334_v4, %v3053_v33  ;;  %v349_v16 = vrot.slane %v335_v6, %v3053_v33  ;;  %v163_v17 = vpop.permute.xlu1 %162  ;;  %v169_v18 = vpop.permute.xlu0 %168 }
 0x18e   :  { %v222_v19 = vcombine.low %v3037_v13, %v163_v17  ;;  %v223_v20 = vcombine.high %v3037_v13, %v163_v17  ;;  %v238_v21 = vcombine.low %v157_v57, %v169_v18  ;;  %v239_v22 = vcombine.high %v157_v57, %v169_v18 }
 0x18f   :  { %v2498_v23 = vcombine.low %v326_v12, %v333_v14  ;;  %v2500_v24 = vcombine.high %v326_v12, %v333_v14  ;;  %v2502_v25 = vcombine.low %v342_v15, %v349_v16  ;;  %v2504_v27 = vcombine.high %v342_v15, %v349_v16 }
 0x190   :  { %v230_v28 = vrot.slane %v222_v19, %v3051_v26  ;;  %v237_v29 = vrot.slane %v223_v20, %v3051_v26  ;;  %v246_v30 = vrot.slane %v238_v21, %v3051_v26  ;;  %v253_v31 = vrot.slane %v239_v22, %v3051_v26 }
 0x191   :  { %v3090_v32 = vrot.slane %v2498_v23, %v3051_v26  ;;  %v3093_v34 = vrot.slane %v2500_v24, %v3051_v26  ;;  %v3096_v35 = vrot.slane %v2502_v25, %v3051_v26  ;;  %v3099_v36 = vrot.slane %v2504_v27, %v3051_v26  ;;  %v171_v37 = vpop.permute.xlu1 %170  ;;  %v165_v38 = vpop.permute.xlu0 %164 }
 0x192   :  { %v286_v39 = vcombine.low %v230_v28, %v246_v30  ;;  %v287_v40 = vcombine.high %v230_v28, %v246_v30  ;;  %v302_v41 = vcombine.low %v237_v29, %v253_v31  ;;  %v303_v42 = vcombine.high %v237_v29, %v253_v31 }
 0x193   :  { %v442_v43 = vcombine.low %v159_v56, %v171_v37  ;;  %v443_v44 = vcombine.high %v159_v56, %v171_v37  ;;  %v426_v45 = vcombine.low %v3033_v11, %v165_v38  ;;  %v427_v46 = vcombine.high %v3033_v11, %v165_v38 }
 0x194   :  { %v294_v47 = vrot.slane %v286_v39, %v3053_v33  ;;  %v301_v48 = vrot.slane %v287_v40, %v3053_v33  ;;  %v310_v49 = vrot.slane %v302_v41, %v3053_v33  ;;  %v317_v50 = vrot.slane %v303_v42, %v3053_v33 }
 0x195   :  { %v450_v51 = vrot.slane %v442_v43, %v3051_v26  ;;  %v457_v52 = vrot.slane %v443_v44, %v3051_v26  ;;  %v434_v53 = vrot.slane %v426_v45, %v3051_v26  ;;  %v441_v54 = vrot.slane %v427_v46, %v3051_v26 }
 0x196   :  { %v2497_v55 = vcombine.low %v294_v47, %v301_v48  ;;  %v2499_v56 = vcombine.high %v294_v47, %v301_v48  ;;  %v2501_v57 = vcombine.low %v310_v49, %v317_v50  ;;  %v2503_v58 = vcombine.high %v310_v49, %v317_v50 }
 0x197   :  { %v490_v59 = vcombine.low %v434_v53, %v450_v51  ;;  %v491_v60 = vcombine.high %v434_v53, %v450_v51  ;;  %v506_v61 = vcombine.low %v441_v54, %v457_v52  ;;  %v507_v62 = vcombine.high %v441_v54, %v457_v52 }
 0x198   :  { %v3112_v63 = vrot.slane %v2497_v55, %v3051_v26  ;;  %v3115_v4 = vrot.slane %v2499_v56, %v3051_v26  ;;  %v3118_v6 = vrot.slane %v2501_v57, %v3051_v26  ;;  %v686_v12 = vrot.slane %v2503_v58, %v3051_v26 }
 0x199   :  { %v498_v14 = vrot.slane %v490_v59, %v3053_v33  ;;  %v505_v15 = vrot.slane %v491_v60, %v3053_v33  ;;  %v514_v16 = vrot.slane %v506_v61, %v3053_v33  ;;  %v521_v17 = vrot.slane %v507_v62, %v3053_v33 }
 0x19a   :  { %v710_v18 = vcombine.low %v3090_v32, %v3093_v34  ;;  %v742_v19 = vcombine.low %v3096_v35, %v3099_v36  ;;  %v846_v20 = vcombine.low %v3068_v7, %v3071_v8  ;;  %v878_v21 = vcombine.low %v3074_v9, %v3077_v10 }
 0x19b   :  { %v2505_v22 = vcombine.low %v498_v14, %v505_v15  ;;  %v2507_v23 = vcombine.high %v498_v14, %v505_v15  ;;  %v2509_v24 = vcombine.low %v514_v16, %v521_v17  ;;  %v2511_v25 = vcombine.high %v514_v16, %v521_v17 }
 0x19c   :  { %v718_v27 = vrot.slane %v710_v18, %v3053_v33  ;;  %v750_v28 = vrot.slane %v742_v19, %v3053_v33  ;;  %v854_v29 = vrot.slane %v846_v20, %v3053_v33  ;;  %v886_v30 = vrot.slane %v878_v21, %v3053_v33 }
 0x19d   :  { %v774_v31 = vrot.slane %v2505_v22, %v3051_v26  ;;  %v790_v37 = vrot.slane %v2507_v23, %v3051_v26  ;;  %v806_v38 = vrot.slane %v2509_v24, %v3051_v26  ;;  %v822_v39 = vrot.slane %v2511_v25, %v3051_v26 }
 0x19e   :  { %v762_v40 = vcombine.low %v718_v27, %v750_v28  ;;  %v898_v41 = vcombine.low %v854_v29, %v886_v30  ;;  %v763_v42 = vcombine.high %v718_v27, %v750_v28  ;;  %v899_v43 = vcombine.high %v854_v29, %v886_v30  ;;  %v67_v27 = vld [vmem:[#allocation5 + $0x90] sm:$0xff] }
 0x19f   :  { %v830_v44 = vcombine.low %v774_v31, %v790_v37  ;;  %v862_v45 = vcombine.low %v806_v38, %v822_v39  ;;  %v711_v49 = vcombine.high %v3090_v32, %v3093_v34  ;;  %v743_v50 = vcombine.high %v3096_v35, %v3099_v36 }
 0x1a0   :  { %v2734_v47 = vpack.c.bf16 %v898_v41, %v762_v40  ;;  %v2740_v48 = vpack.c.bf16 %v899_v43, %v763_v42  ;;  %v847_v51 = vcombine.high %v3068_v7, %v3071_v8  ;;  %v879_v52 = vcombine.high %v3074_v9, %v3077_v10 }
 0x1a1   :  { %v694_v53 = vcombine.low %v3112_v63, %v3115_v4  ;;  %v726_v54 = vcombine.low %v3118_v6, %v686_v12  ;;  %v725_v32 = vrot.slane %v711_v49, %v3053_v33  ;;  %v757_v34 = vrot.slane %v743_v50, %v3053_v33 }
 0x1a2   :  { %2736 = vmatprep.subr.msk.bf16.mxu1 %vm3143_vm2, %v2734_v47  ;;  %2742 = vmatprep.subr.msk.bf16.mxu0 %vm3143_vm2, %v2740_v48  ;;  %v838_v7 = vrot.slane %v830_v44, %v3053_v33  ;;  %v861_v8 = vrot.slane %v847_v51, %v3053_v33  ;;  %v893_v9 = vrot.slane %v879_v52, %v3053_v33 }
 0x1a3   :  { %2739 = vmatpush3.bf16.xpose.msk.msra.mxu1 %vm3143_vm2, %v2734_v47  ;;  %2745 = vmatpush3.bf16.xpose.msk.msra.mxu0 %vm3143_vm2, %v2740_v48  ;;  %v702_v10 = vrot.slane %v694_v53, %v3053_v33  ;;  %v764_v35 = vcombine.low %v725_v32, %v757_v34  ;;  %v765_v36 = vcombine.high %v725_v32, %v757_v34 }
 0x1a4   :  { %v734_v55 = vrot.slane %v726_v54, %v3053_v33  ;;  %v870_v56 = vrot.slane %v862_v45, %v3053_v33  ;;  %v900_v57 = vcombine.low %v861_v8, %v893_v9  ;;  %v901_v58 = vcombine.high %v861_v8, %v893_v9 }
 0x1a5   :  { %v695_v59 = vcombine.high %v3112_v63, %v3115_v4  ;;  %v727_v60 = vcombine.high %v3118_v6, %v686_v12  ;;  %v831_v20 = vcombine.high %v774_v31, %v790_v37  ;;  %v863_v21 = vcombine.high %v806_v38, %v822_v39  ;;  %v66_v38 = vld [vmem:[#allocation5 + $0x88] sm:$0xff] }
 0x1a6   :  { %v758_v61 = vcombine.low %v702_v10, %v734_v55  ;;  %v759_v62 = vcombine.high %v702_v10, %v734_v55  ;;  %v894_v14 = vcombine.low %v838_v7, %v870_v56  ;;  %v895_v15 = vcombine.high %v838_v7, %v870_v56 }
 0x1a7   :  { %v2746_v16 = vpack.c.bf16 %v900_v57, %v764_v35  ;;  %v2752_v17 = vpack.c.bf16 %v901_v58, %v765_v36  ;;  %v709_v18 = vrot.slane %v695_v59, %v3053_v33  ;;  %v741_v19 = vrot.slane %v727_v60, %v3053_v33 }
 0x1a8   :  { %2633 = vmatprep.mubr.msk.f32.mxu1 %vm1038_vm1, %v758_v61  ;;  %2640 = vmatprep.mubr.msk.f32.mxu0 %vm1038_vm1, %v759_v62  ;;  %v845_v6 = vrot.slane %v831_v20, %v3053_v33  ;;  %v877_v12 = vrot.slane %v863_v21, %v3053_v33 }
 0x1a9   :  { %2748 = vmatprep.subr.msk.bf16.mxu1 %vm3143_vm2, %v2746_v16  ;;  %2754 = vmatprep.subr.msk.bf16.mxu0 %vm3143_vm2, %v2752_v17  ;;  %v760_v63 = vcombine.low %v709_v18, %v741_v19  ;;  %v761_v4 = vcombine.high %v709_v18, %v741_v19 }
 0x1aa   :  { %2634 = vmatmul.mubr.msk.f32.vlgmr.msra.gmra.mrb[2].mxu1 %vm1038_vm1, %v894_v14  ;;  %2641 = vmatmul.mubr.msk.f32.vlgmr.msra.gmra.mrb[0].mxu0 %vm1038_vm1, %v895_v15  ;;  %v896_v22 = vcombine.low %v845_v6, %v877_v12  ;;  %v897_v23 = vcombine.high %v845_v6, %v877_v12 }
 0x1ab   :  { %2751 = vmatpush3.bf16.xpose.msk.msra.mxu1 %vm3143_vm2, %v2746_v16  ;;  %2757 = vmatpush3.bf16.xpose.msk.msra.mxu0 %vm3143_vm2, %v2752_v17 }
 0x1ac   :  { %2647 = vmatprep.mubr.msk.f32.mxu1 %vm1038_vm1, %v760_v63  ;;  %2654 = vmatprep.mubr.msk.f32.mxu0 %vm1038_vm1, %v761_v4 }
 0x1b2   :  { %2648 = vmatmul.mubr.msk.f32.vlgmr.msra.gmra.mrb[4].mxu1 %vm1038_vm1, %v896_v22  ;;  %2655 = vmatmul.mubr.msk.f32.vlgmr.msra.gmra.mrb[2].mxu0 %vm1038_vm1, %v897_v23 }
 0x27d   :  { %v2635_v24 = vpop.f32.mrb[2].mxu1  ;;  %v2642_v25 = vpop.f32.mrb[0].mxu0 }
 0x27e   :  { %v1388_v28 = vmul.f32 0.35355338, %v2635_v24  ;;  %v1390_v29 = vmul.f32 0.35355338, %v2642_v25  ;;  %v1117_v30 = vpop.f32.mrb[3].mxu1  ;;  %v1204_v31 = vpop.f32.mrb[1].mxu0 }
 0x27f   :  { %v1387_v37 = vmul.f32 0.35355338, %v1117_v30  ;;  %v1389_v41 = vmul.f32 0.35355338, %v1204_v31 }
 0x280   :  { %v3197_v39 = vadd.f32 %v1390_v29, %v67_v27  ;;  %v1396_v40 = vadd.f32 %v1388_v28, %v67_v27 }
 0x281   :  { %v1395_v44 = vadd.f32 %v1387_v37, %v66_v38  ;;  %v1397_v47 = vadd.f32 %v1389_v41, %v66_v38 }
 0x282   :  { %v1413_v42 = vsel %vm1403_vm3, %v3197_v39, -inf  ;;  %v1407_v43 = vsel %vm1403_vm3, %v1396_v40, -inf }
 0x283   :  { %1414 = vmax.xlane.f32.xlu0 %v1413_v42  ;;  %1408 = vmax.xlane.f32.xlu1 %v1407_v43  ;;  %v1404_v51 = vsel %vm1403_vm3, %v1395_v44, -inf  ;;  %v1410_v32 = vsel %vm1403_vm3, %v1397_v47, -inf }
 0x285   :  { %v2649_v45 = vpop.f32.mrb[4].mxu1  ;;  %v2656_v46 = vpop.f32.mrb[2].mxu0 }
 0x286   :  { %v1392_v48 = vmul.f32 0.35355338, %v2649_v45  ;;  %v1291_v49 = vpop.f32.mrb[5].mxu1  ;;  %v1378_v50 = vpop.f32.mrb[3].mxu0  ;;  %v1394_v34 = vmul.f32 0.35355338, %v2656_v46 }
 0x287   :  { %v1391_v52 = vmul.f32 0.35355338, %v1291_v49  ;;  %v1393_v53 = vmul.f32 0.35355338, %v1378_v50  ;;  %1405 = vmax.xlane.f32.xlu0 %v1404_v51 }
 0x288   :  { %v3203_v54 = vadd.f32 %v1392_v48, %v67_v27  ;;  %v1402_v36 = vadd.f32 %v1394_v34, %v67_v27 }
 0x289   :  { %v1399_v8 = vadd.f32 %v1391_v52, %v66_v38  ;;  %v1401_v9 = vadd.f32 %v1393_v53, %v66_v38 }
 0x28a   :  { %v1419_v7 = vsel %vm1403_vm3, %v3203_v54, -inf  ;;  %v1425_v55 = vsel %vm1403_vm3, %v1402_v36, -inf }
 0x28b   :  { %1420 = vmax.xlane.f32.xlu1 %v1419_v7  ;;  %1411 = vmax.xlane.f32.xlu0 %v1410_v32  ;;  %v1416_v10 = vsel %vm1403_vm3, %v1399_v8, -inf  ;;  %v1422_v35 = vsel %vm1403_vm3, %v1401_v9, -inf }
 0x28f   :  { %1417 = vmax.xlane.f32.xlu1 %v1416_v10  ;;  %1423 = vmax.xlane.f32.xlu0 %v1422_v35 }
 0x293   :  { %1426 = vmax.xlane.f32.xlu0 %v1425_v55 }
 0x2a0   :  { %198 = vrot.lane.b32.xlu1 %v3037_v13, %s2964_s12 }
 0x2a4   :  { %204 = vrot.lane.b32.xlu1 %v3037_v13, %s2965_s13 }
 0x2a8   :  { %206 = vrot.lane.b32.xlu1 %v3033_v11, %s2965_s13 }
 0x2a9   :  { %200 = vrot.lane.b32.xlu0 %v3033_v11, %s2964_s12 }
 0x2ac   :  { %212 = vrot.lane.b32.xlu1 %v3033_v11, %s2966_s14 }
 0x2ad   :  { %210 = vrot.lane.b32.xlu0 %v3037_v13, %s2966_s14 }
 0x2b1   :  { %216 = vrot.lane.b32.xlu0 %v3037_v13, %s2967_s15 }
 0x310   :  { %v1415_v56 = vpop.xlane.xlu0 %1414  ;;  %v1409_v57 = vpop.xlane.xlu1 %1408 }
 0x311   :  { %v1429_v58 = vsub.f32 %v1396_v40, %v1409_v57  ;;  %v1431_v41 = vsub.f32 %v3197_v39, %v1415_v56 }
 0x313   :  { %v1438_v59 = vmul.f32 1.442695, %v1429_v58  ;;  %v1442_v42 = vmul.f32 1.442695, %v1431_v41 }
 0x314   :  { %v1406_v60 = vpop.xlane.xlu0 %1405 }
 0x315   :  { %v1428_v61 = vsub.f32 %v1395_v44, %v1406_v60  ;;  %2837 = vpow2.f32 %v1438_v59 }
 0x317   :  { %v1436_v62 = vmul.f32 1.442695, %v1428_v61 }
 0x318   :  { %v1421_v14 = vpop.xlane.xlu1 %1420  ;;  %v1412_v15 = vpop.xlane.xlu0 %1411 }
 0x319   :  { %2839 = vpow2.f32 %v1436_v62  ;;  %v1430_v16 = vsub.f32 %v1397_v47, %v1412_v15  ;;  %v1433_v43 = vsub.f32 %v3203_v54, %v1421_v14 }
 0x31b   :  { %v1440_v17 = vmul.f32 1.442695, %v1430_v16  ;;  %v1446_v44 = vmul.f32 1.442695, %v1433_v43 }
 0x31c   :  { %v1418_v18 = vpop.xlane.xlu1 %1417  ;;  %v1424_v19 = vpop.xlane.xlu0 %1423 }
 0x31d   :  { %v1432_v20 = vsub.f32 %v1399_v8, %v1418_v18  ;;  %v1434_v21 = vsub.f32 %v1401_v9, %v1424_v19  ;;  %2841 = vpow2.f32 %v1440_v17 }
 0x31f   :  { %v1444_v63 = vmul.f32 1.442695, %v1432_v20  ;;  %v3219_v13 = vpop.eup %2837  ;;  %v1448_v4 = vmul.f32 1.442695, %v1434_v21 }
 0x320   :  { %v1427_v6 = vpop.xlane.xlu0 %1426  ;;  %v1455_v22 = vsel %vm1403_vm3, %v3219_v13, 0.0  ;;  %v199_v39 = vpop.permute.xlu1 %198 }
 0x321   :  { %2843 = vpow2.f32 %v1444_v63  ;;  %v1435_v12 = vsub.f32 %v1402_v36, %v1427_v6  ;;  %1456 = vadd.xlane.f32.xlu0 %v1455_v22 }
 0x322   :  { %2845 = vpow2.f32 %v1448_v4 }
 0x323   :  { %v3223_v23 = vpop.eup %2839  ;;  %v1450_v24 = vmul.f32 1.442695, %v1435_v12 }
 0x324   :  { %v1452_v25 = vsel %vm1403_vm3, %v3223_v23, 0.0  ;;  %v205_v50 = vpop.permute.xlu1 %204 }
 0x325   :  { %1453 = vadd.xlane.f32.xlu1 %v1452_v25  ;;  %2847 = vpow2.f32 %v1450_v24 }
 0x326   :  { %2849 = vpow2.f32 %v1442_v42 }
 0x327   :  { %v3227_v27 = vpop.eup %2841  ;;  %2851 = vpow2.f32 %v1446_v44 }
 0x328   :  { %v1458_v28 = vsel %vm1403_vm3, %v3227_v27, 0.0  ;;  %v207_v54 = vpop.permute.xlu1 %206 }
 0x329   :  { %1459 = vadd.xlane.f32.xlu0 %v1458_v28 }
 0x32b   :  { %v3231_v29 = vpop.eup %2843 }
 0x32c   :  { %v1464_v30 = vsel %vm1403_vm3, %v3231_v29, 0.0  ;;  %v3235_v31 = vpop.eup %2845  ;;  %v213_v35 = vpop.permute.xlu1 %212 }
 0x32d   :  { %1465 = vadd.xlane.f32.xlu0 %v1464_v30  ;;  %v1470_v37 = vsel %vm1403_vm3, %v3235_v31, 0.0 }
 0x32f   :  { %v3239_v38 = vpop.eup %2847 }
 0x330   :  { %v1473_v40 = vsel %vm1403_vm3, %v3239_v38, 0.0  ;;  %v3247_v45 = vpop.eup %2849 }
 0x331   :  { %1471 = vadd.xlane.f32.xlu0 %v1470_v37  ;;  %v1461_v46 = vsel %vm1403_vm3, %v3247_v45, 0.0  ;;  %v3251_v47 = vpop.eup %2851 }
 0x332   :  { %v1467_v48 = vsel %vm1403_vm3, %v3251_v47, 0.0 }
 0x335   :  { %1474 = vadd.xlane.f32.xlu0 %v1473_v40 }
 0x336   :  { %218 = vrot.lane.b32.xlu1 %v3033_v11, %s2967_s15  ;;  %v201_v11 = vpop.permute.xlu0 %200 }
 0x337   :  { %v562_v15 = vcombine.low %v201_v11, %v213_v35  ;;  %v563_v16 = vcombine.high %v201_v11, %v213_v35 }
 0x339   :  { %v570_v12 = vrot.slane %v562_v15, %v3051_v26  ;;  %v577_v22 = vrot.slane %v563_v16, %v3051_v26 }
 0x33a   :  { %v211_v49 = vpop.permute.xlu0 %210 }
 0x33b   :  { %v358_v32 = vcombine.low %v199_v39, %v211_v49  ;;  %v359_v34 = vcombine.high %v199_v39, %v211_v49 }
 0x33d   :  { %v366_v9 = vrot.slane %v358_v32, %v3051_v26  ;;  %v373_v10 = vrot.slane %v359_v34, %v3051_v26 }
 0x33e   :  { %v217_v51 = vpop.permute.xlu0 %216 }
 0x33f   :  { %v374_v52 = vcombine.low %v205_v50, %v217_v51  ;;  %v375_v53 = vcombine.high %v205_v50, %v217_v51 }
 0x341   :  { %v382_v7 = vrot.slane %v374_v52, %v3051_v26  ;;  %v389_v8 = vrot.slane %v375_v53, %v3051_v26 }
 0x343   :  { %v390_v36 = vcombine.low %v366_v9, %v382_v7  ;;  %v391_v55 = vcombine.high %v366_v9, %v382_v7  ;;  %v406_v56 = vcombine.low %v373_v10, %v389_v8  ;;  %v407_v57 = vcombine.high %v373_v10, %v389_v8 }
 0x345   :  { %v398_v58 = vrot.slane %v390_v36, %v3053_v33  ;;  %v405_v59 = vrot.slane %v391_v55, %v3053_v33  ;;  %v414_v60 = vrot.slane %v406_v56, %v3053_v33  ;;  %v421_v61 = vrot.slane %v407_v57, %v3053_v33 }
 0x347   :  { %v902_v17 = vcombine.low %v398_v58, %v405_v59  ;;  %v2513_v18 = vcombine.high %v398_v58, %v405_v59  ;;  %v918_v19 = vcombine.low %v414_v60, %v421_v61  ;;  %v2514_v21 = vcombine.high %v414_v60, %v421_v61 }
 0x349   :  { %v909_v28 = vrot.slane %v902_v17, %v3051_v26  ;;  %v917_v30 = vrot.slane %v2513_v18, %v3051_v26  ;;  %v925_v37 = vrot.slane %v918_v19, %v3051_v26  ;;  %v933_v40 = vrot.slane %v2514_v21, %v3051_v26 }
 0x34b   :  { %v950_v32 = vcombine.low %v925_v37, %v933_v40  ;;  %v935_v8 = vcombine.high %v909_v28, %v917_v30  ;;  %v951_v9 = vcombine.high %v925_v37, %v933_v40 }
 0x34d   :  { %v958_v56 = vrot.slane %v950_v32, %v3053_v33  ;;  %v949_v60 = vrot.slane %v935_v8, %v3053_v33  ;;  %v965_v61 = vrot.slane %v951_v9, %v3053_v33 }
 0x34f   :  { %v969_v40 = vcombine.high %v949_v60, %v965_v61 }
 0x35a   :  { %1462 = vadd.xlane.f32.xlu1 %v1461_v46 }
 0x35e   :  { %1468 = vadd.xlane.f32.xlu1 %v1467_v48 }
 0x36f   :  { %2828 = vrot.lane.b32.xlu1 %v2827_v3, %s2968_s16 }
 0x3ae   :  { %v1457_v14 = vpop.xlane.xlu0 %1456 }
 0x3b2   :  { %v1454_v62 = vpop.xlane.xlu1 %1453 }
 0x3b3   :  { %2853 = vrcp.f32 %v1454_v62 }
 0x3b6   :  { %v219_v20 = vpop.permute.xlu1 %218  ;;  %v1460_v63 = vpop.xlane.xlu0 %1459 }
 0x3b7   :  { %v578_v4 = vcombine.low %v207_v54, %v219_v20  ;;  %v579_v6 = vcombine.high %v207_v54, %v219_v20  ;;  %v934_v54 = vcombine.low %v909_v28, %v917_v30 }
 0x3b9   :  { %v586_v24 = vrot.slane %v578_v4, %v3051_v26  ;;  %v593_v25 = vrot.slane %v579_v6, %v3051_v26  ;;  %v942_v55 = vrot.slane %v934_v54, %v3053_v33 }
 0x3ba   :  { %v1466_v44 = vpop.xlane.xlu0 %1465 }
 0x3bb   :  { %v594_v41 = vcombine.low %v570_v12, %v586_v24  ;;  %v595_v42 = vcombine.high %v570_v12, %v586_v24  ;;  %v610_v43 = vcombine.low %v577_v22, %v593_v25  ;;  %v611_v46 = vcombine.high %v577_v22, %v593_v25 }
 0x3bc   :  { %2855 = vrcp.f32 %v1466_v44  ;;  %v966_v20 = vcombine.low %v942_v55, %v958_v56  ;;  %v967_v24 = vcombine.high %v942_v55, %v958_v56 }
 0x3bd   :  { %v2854_v48 = vpop.eup %2853  ;;  %v602_v11 = vrot.slane %v594_v41, %v3053_v33  ;;  %v609_v39 = vrot.slane %v595_v42, %v3053_v33  ;;  %v618_v49 = vrot.slane %v610_v43, %v3053_v33  ;;  %v625_v50 = vrot.slane %v611_v46, %v3053_v33 }
 0x3be   :  { %v1484_v51 = vmul.f32 %v2854_v48, %v3223_v23  ;;  %2857 = vrcp.f32 %v1457_v14  ;;  %v1472_v43 = vpop.xlane.xlu0 %1471 }
 0x3bf   :  { %v970_v52 = vcombine.low %v602_v11, %v609_v39  ;;  %v2515_v53 = vcombine.high %v602_v11, %v609_v39  ;;  %v986_v34 = vcombine.low %v618_v49, %v625_v50  ;;  %v2516_v7 = vcombine.high %v618_v49, %v625_v50 }
 0x3c0   :  { %2661 = vmatprep.mubr.msk.f32.mxu1 %vm1403_vm3, %v1484_v51  ;;  %2859 = vrcp.f32 %v1460_v63  ;;  %v968_v63 = vcombine.low %v949_v60, %v965_v61 }
 0x3c1   :  { %v977_v10 = vrot.slane %v970_v52, %v3051_v26  ;;  %v985_v35 = vrot.slane %v2515_v53, %v3051_v26  ;;  %v993_v36 = vrot.slane %v986_v34, %v3051_v26  ;;  %v1001_v23 = vrot.slane %v2516_v7, %v3051_v26 }
 0x3c2   :  { %2861 = vrcp.f32 %v1472_v43  ;;  %v1475_v44 = vpop.xlane.xlu0 %1474 }
 0x3c3   :  { %v1002_v57 = vcombine.low %v977_v10, %v985_v35  ;;  %v1003_v58 = vcombine.high %v977_v10, %v985_v35  ;;  %v1018_v59 = vcombine.low %v993_v36, %v1001_v23  ;;  %v1019_v62 = vcombine.high %v993_v36, %v1001_v23 }
 0x3c5   :  { %v1010_v14 = vrot.slane %v1002_v57, %v3053_v33  ;;  %v1017_v15 = vrot.slane %v1003_v58, %v3053_v33  ;;  %v1026_v17 = vrot.slane %v1018_v59, %v3053_v33  ;;  %v1033_v18 = vrot.slane %v1019_v62, %v3053_v33 }
 0x3c6   :  { %v2856_v16 = vpop.eup %2855 }
 0x3c7   :  { %v1488_v19 = vmul.f32 %v2856_v16, %v3231_v29  ;;  %v1034_v21 = vcombine.low %v1010_v14, %v1026_v17  ;;  %v1036_v4 = vcombine.low %v1017_v15, %v1033_v18  ;;  %v1035_v6 = vcombine.high %v1010_v14, %v1026_v17 }
 0x3c8   :  { %v2858_v25 = vpop.eup %2857  ;;  %v1037_v37 = vcombine.high %v1017_v15, %v1033_v18 }
 0x3c9   :  { %2675 = vmatprep.mubr.msk.f32.mxu0 %vm1403_vm3, %v1488_v19  ;;  %v2758_v12 = vpack.c.bf16 %v1034_v21, %v966_v20  ;;  %v2766_v22 = vpack.c.bf16 %v1036_v4, %v968_v63  ;;  %v2762_v30 = vpack.c.bf16 %v1035_v6, %v967_v24  ;;  %v1485_v29 = vmul.f32 %v2858_v25, %v3219_v13 }
 0x3ca   :  { %v2860_v28 = vpop.eup %2859  ;;  %v2770_v42 = vpack.c.bf16 %v1037_v37, %v969_v40 }
 0x3cb   :  { %2759 = vmatprep.subr.bf16.mxu1 %v2758_v12  ;;  %2767 = vmatprep.subr.bf16.mxu0 %v2766_v22  ;;  %v1486_v41 = vmul.f32 %v2860_v28, %v3227_v27 }
 0x3cc   :  { %2761 = vmatpush3.bf16.msra.mxu1 %v2758_v12  ;;  %2769 = vmatpush3.bf16.msra.mxu0 %v2766_v22  ;;  %v2862_v13 = vpop.eup %2861 }
 0x3cd   :  { %2763 = vmatprep.subr.bf16.mxu1 %v2762_v30  ;;  %v1490_v49 = vmul.f32 %v2862_v13, %v3235_v31 }
 0x3cf   :  { %2662 = vmatmul.mubr.msk.f32.vlgmr.msra.gmra.mrb[6].mxu1 %vm1403_vm3, %v1485_v29 }
 0x3d0   :  { %2765 = vmatpush3.bf16.msra.mxu1 %v2762_v30  ;;  %2668 = vmatprep.mubr.msk.f32.mxu1 %vm1403_vm3, %v1486_v41 }
 0x3d1   :  { %2771 = vmatprep.subr.bf16.mxu1 %v2770_v42 }
 0x3e7   :  { %v1463_v46 = vpop.xlane.xlu1 %1462 }
 0x3e8   :  { %2863 = vrcp.f32 %v1463_v46 }
 0x3e9   :  { %2865 = vrcp.f32 %v1475_v44 }
 0x3eb   :  { %v1469_v48 = vpop.xlane.xlu1 %1468 }
 0x3ec   :  { %2867 = vrcp.f32 %v1469_v48 }
 0x3f2   :  { %v2864_v11 = vpop.eup %2863 }
 0x3f3   :  { %v1487_v39 = vmul.f32 %v2864_v11, %v3247_v45  ;;  %v2866_v27 = vpop.eup %2865  ;;  %v2832_v45 = vpack.i.bf16 %v3027_v5, %v3021_v2 }
 0x3f4   :  { %v1491_v51 = vmul.f32 %v2866_v27, %v3239_v38  ;;  %v2829_v38 = vpop.permute.xlu1 %2828 }
 0x3f5   :  { %2669 = vmatmul.mubr.msk.f32.vlgmr.msra.gmra.mrb[8].mxu1 %vm1403_vm3, %v1487_v39  ;;  %2833 = vrot.lane.b32.xlu0 %v2832_v45, %s2968_s16  ;;  %v2831_v34 = vunpack.i.h.bf16 %v2829_v38 }
 0x3f6   :  { %v2868_v50 = vpop.eup %2867  ;;  %2773 = vmatpush3.bf16.msra.mxu1 %v2770_v42  ;;  %2682 = vmatprep.mubr.msk.f32.mxu1 %vm1403_vm3, %v1490_v49 }
 0x3f7   :  { %v1489_v52 = vmul.f32 %v2868_v50, %v3251_v47  ;;  %v2830_v47 = vunpack.i.l.bf16 %v2829_v38 }
 0x3f9   :  { %2676 = vmatmul.mubr.msk.f32.vlgmr.msra.gmra.mrb[4].mxu0 %vm1403_vm3, %v1489_v52  ;;  %2683 = vmatmul.mubr.msk.f32.vlgmr.msra.gmra.mrb[10].mxu1 %vm1403_vm3, %v1491_v51  ;;  %v2774_v10 = vpack.c.bf16 %v2831_v34, %v2830_v47 }
 0x3fb   :  { %2775 = vmatprep.subr.bf16.mxu0 %v2774_v10 }
 0x3fc   :  { %2777 = vmatpush3.bf16.msra.mxu0 %v2774_v10 }
 0x467   :  { %v3308_v7 = vpop.permute.xlu0 %2833 }
 0x468   :  { %v2836_v2 = vunpack.i.h.bf16 %v3308_v7  ;;  %v2835_v5 = vunpack.i.l.bf16 %v3308_v7 }
 0x4a2   :  { %v2663_v31 = vpop.f32.mrb[6].mxu1 }
 0x4a3   :  { %v1564_v53 = vpop.f32.mrb[7].mxu1 }
 0x4c8   :  { %v2670_v54 = vpop.f32.mrb[8].mxu1 }
 0x4c9   :  { %v1645_v32 = vpop.f32.mrb[9].mxu1 }
 0x4cc   :  { %v2677_v8 = vpop.f32.mrb[4].mxu0  ;;  %v2684_v9 = vpop.f32.mrb[10].mxu1 }
 0x4cd   :  { %v1884_v35 = vcombine.low %v2663_v31, %v2677_v8  ;;  %v1885_v0 = vcombine.high %v2663_v31, %v2677_v8  ;;  %v1900_v1 = vcombine.low %v2670_v54, %v2684_v9  ;;  %v1901_v3 = vcombine.high %v2670_v54, %v2684_v9  ;;  %v1726_v36 = vpop.f32.mrb[5].mxu0  ;;  %v1807_v23 = vpop.f32.mrb[11].mxu1 }
 0x4ce   :  { %v1816_v55 = vcombine.low %v1564_v53, %v1726_v36  ;;  %v1817_v56 = vcombine.high %v1564_v53, %v1726_v36  ;;  %v1832_v57 = vcombine.low %v1645_v32, %v1807_v23  ;;  %v1833_v58 = vcombine.high %v1645_v32, %v1807_v23 }
 0x4cf   :  { %v1892_v59 = vrot.slane %v1884_v35, %v3051_v26  ;;  %v1899_v60 = vrot.slane %v1885_v0, %v3051_v26  ;;  %v1908_v61 = vrot.slane %v1900_v1, %v3051_v26  ;;  %v1915_v62 = vrot.slane %v1901_v3, %v3051_v26 }
 0x4d0   :  { %v1824_v14 = vrot.slane %v1816_v55, %v3051_v26  ;;  %v1831_v15 = vrot.slane %v1817_v56, %v3051_v26  ;;  %v1840_v16 = vrot.slane %v1832_v57, %v3051_v26  ;;  %v1847_v17 = vrot.slane %v1833_v58, %v3051_v26 }
 0x4d1   :  { %v1916_v18 = vcombine.low %v1892_v59, %v1908_v61  ;;  %v1917_v19 = vcombine.high %v1892_v59, %v1908_v61  ;;  %v1932_v20 = vcombine.low %v1899_v60, %v1915_v62  ;;  %v1933_v21 = vcombine.high %v1899_v60, %v1915_v62 }
 0x4d2   :  { %v1848_v63 = vcombine.low %v1824_v14, %v1840_v16  ;;  %v1849_v4 = vcombine.high %v1824_v14, %v1840_v16  ;;  %v1864_v6 = vcombine.low %v1831_v15, %v1847_v17  ;;  %v1865_v12 = vcombine.high %v1831_v15, %v1847_v17 }
 0x4d3   :  { %v1924_v22 = vrot.slane %v1916_v18, %v3053_v33  ;;  %v1931_v24 = vrot.slane %v1917_v19, %v3053_v33  ;;  %v1940_v25 = vrot.slane %v1932_v20, %v3053_v33  ;;  %v1947_v28 = vrot.slane %v1933_v21, %v3053_v33 }
 0x4d4   :  { %v1856_v30 = vrot.slane %v1848_v63, %v3053_v33  ;;  %v1863_v37 = vrot.slane %v1849_v4, %v3053_v33  ;;  %v1872_v29 = vrot.slane %v1864_v6, %v3053_v33  ;;  %v1879_v40 = vrot.slane %v1865_v12, %v3053_v33  ;;  %v2545_v4 = vld [vmem:[#allocation5 + $0x82] ss:$0 sm:$0xff] }
 0x4d5   :  { %v2020_v41 = vcombine.low %v1924_v22, %v1931_v24  ;;  %v2543_v42 = vcombine.high %v1924_v22, %v1931_v24  ;;  %v2036_v43 = vcombine.low %v1940_v25, %v1947_v28  ;;  %v2544_v44 = vcombine.high %v1940_v25, %v1947_v28  ;;  %v2877_v25 = vld [vmem:[#allocation2 + $0x8] sm:$0xff] }
 0x4d6   :  { %v1952_v46 = vcombine.low %v1856_v30, %v1863_v37  ;;  %v2541_v48 = vcombine.high %v1856_v30, %v1863_v37  ;;  %v1968_v13 = vcombine.low %v1872_v29, %v1879_v40  ;;  %v2542_v11 = vcombine.high %v1872_v29, %v1879_v40  ;;  %v2878_v30 = vld [vmem:[#allocation2] sm:$0xff] }
 0x4d7   :  { %v2027_v39 = vrot.slane %v2020_v41, %v3051_v26  ;;  %v2035_v27 = vrot.slane %v2543_v42, %v3051_v26  ;;  %v2043_v49 = vrot.slane %v2036_v43, %v3051_v26  ;;  %v2051_v50 = vrot.slane %v2544_v44, %v3051_v26 }
 0x4d8   :  { %v1959_v51 = vrot.slane %v1952_v46, %v3051_v26  ;;  %v1967_v52 = vrot.slane %v2541_v48, %v3051_v26  ;;  %v1975_v45 = vrot.slane %v1968_v13, %v3051_v26  ;;  %v1983_v31 = vrot.slane %v2542_v11, %v3051_v26 }
 0x4d9   :  { %v2052_v53 = vcombine.low %v2027_v39, %v2035_v27  ;;  %v2068_v54 = vcombine.low %v2043_v49, %v2051_v50  ;;  %v2053_v32 = vcombine.high %v2027_v39, %v2035_v27  ;;  %v2069_v38 = vcombine.high %v2043_v49, %v2051_v50  ;;  %v46_v49 = vld [vmem:[#allocation5 + $0x20] sm:$0xff]  ;;  %v47_v50 = vld [vmem:[#allocation5 + $0x28] sm:$0xff] }
 0x4da   :  { %v1985_v34 = vcombine.high %v1959_v51, %v1967_v52  ;;  %v2001_v47 = vcombine.high %v1975_v45, %v1983_v31  ;;  %v1984_v8 = vcombine.low %v1959_v51, %v1967_v52  ;;  %v2000_v9 = vcombine.low %v1975_v45, %v1983_v31  ;;  %v48_v51 = vld [vmem:[#allocation5 + $0x30] sm:$0xff]  ;;  %v49_v45 = vld [vmem:[#allocation5 + $0x38] sm:$0xff] }
 0x4db   :  { %v2060_v10 = vrot.slane %v2052_v53, %v3053_v33  ;;  %v2076_v35 = vrot.slane %v2068_v54, %v3053_v33  ;;  %v2067_v0 = vrot.slane %v2053_v32, %v3053_v33  ;;  %v2083_v1 = vrot.slane %v2069_v38, %v3053_v33  ;;  %v50_v53 = vld [vmem:[#allocation5 + $0x40] sm:$0xff]  ;;  %v51_v54 = vld [vmem:[#allocation5 + $0x48] sm:$0xff]  ;;  %v52_v32 = vld [vmem:[#allocation5 + $0x50] sm:$0xff] }
 0x4dc   :  { %v1999_v3 = vrot.slane %v1985_v34, %v3053_v33  ;;  %v2015_v26 = vrot.slane %v2001_v47, %v3053_v33  ;;  %v1992_v36 = vrot.slane %v1984_v8, %v3053_v33  ;;  %v2008_v23 = vrot.slane %v2000_v9, %v3053_v33  ;;  %v53_v34 = vld [vmem:[#allocation5 + $0x58] sm:$0xff]  ;;  %v54_v8 = vld [vmem:[#allocation5 + $0x60] sm:$0xff]  ;;  %v55_v9 = vld [vmem:[#allocation5 + $0x68] sm:$0xff] }
 0x4dd   :  { %v2085_v55 = vcombine.high %v2060_v10, %v2076_v35  ;;  %v2084_v56 = vcombine.low %v2060_v10, %v2076_v35  ;;  %v2086_v57 = vcombine.low %v2067_v0, %v2083_v1  ;;  %v2087_v58 = vcombine.high %v2067_v0, %v2083_v1 }
 0x4de   :  { %v2018_v59 = vcombine.low %v1999_v3, %v2015_v26  ;;  %v2019_v60 = vcombine.high %v1999_v3, %v2015_v26  ;;  %v2017_v61 = vcombine.high %v1992_v36, %v2008_v23  ;;  %v2016_v62 = vcombine.low %v1992_v36, %v2008_v23 }
 0x4df   :  { %2092 = vrot.lane.b32.xlu1 %v2085_v55, %s2953_s20  ;;  %v2778_v14 = vpack.c.bf16 %v2836_v2, %v2835_v5  ;;  %v2782_v52 = vpack.c.bf16 %v47_v50, %v46_v49  ;;  %v2786_v31 = vpack.c.bf16 %v49_v45, %v48_v51  ;;  %v2790_v38 = vpack.c.bf16 %v51_v54, %v50_v53  ;;  %v2548_v55 = vld [vmem:[#allocation5 + $0x83] ss:$0 sm:$0xff]  ;;  %v2557_v54 = vld [vmem:[#allocation5 + $0x87] ss:$0 sm:$0xff] }
 0x4e0   :  { %2098 = vrot.lane.b32.xlu0 %v2018_v59, %s2969_s17  ;;  %v2794_v47 = vpack.c.bf16 %v53_v34, %v52_v32  ;;  %v2798_v10 = vpack.c.bf16 %v55_v9, %v54_v8 }
 0x4e1   :  { %2779 = vmatprep.subr.bf16.mxu0 %v2778_v14  ;;  %2783 = vmatprep.subr.bf16.mxu1 %v2782_v52 }
 0x4e2   :  { %2781 = vmatpush3.bf16.msra.mxu0 %v2778_v14  ;;  %2785 = vmatpush3.bf16.msra.mxu1 %v2782_v52  ;;  %v2556_v52 = vld [vmem:[#allocation5 + $0x86] ss:$0 sm:$0xff] }
 0x4e3   :  { %2100 = vrot.lane.b32.xlu1 %v2086_v57, %s2969_s17  ;;  %2787 = vmatprep.subr.bf16.mxu1 %v2786_v31  ;;  %v2549_v57 = vld [vmem:[#allocation5 + $0x84] ss:$0 sm:$0xff] }
 0x4e4   :  { %2106 = vrot.lane.b32.xlu0 %v2019_v60, %s2970_s18  ;;  %2791 = vmatprep.subr.bf16.mxu0 %v2790_v38 }
 0x4e6   :  { %2789 = vmatpush3.bf16.msra.mxu1 %v2786_v31 }
 0x4e7   :  { %2090 = vrot.lane.b32.xlu1 %v2017_v61, %s2953_s20 }
 0x4eb   :  { %2108 = vrot.lane.b32.xlu1 %v2087_v58, %s2970_s18 }
 0x551   :  { %v2093_v33 = vpop.permute.xlu1 %2092 }
 0x552   :  { %v2099_v15 = vpop.permute.xlu0 %2098  ;;  %v2113_v2 = vsel %vm1038_vm1, %v2084_v56, %v2093_v33  ;;  %v56_v33 = vld [vmem:[#allocation5 + $0x70] sm:$0xff] }
 0x555   :  { %v2101_v16 = vpop.permute.xlu1 %2100 }
 0x556   :  { %v2107_v19 = vpop.permute.xlu0 %2106  ;;  %v2115_v20 = vsel %vm1403_vm3, %v2113_v2, %v2101_v16 }
 0x559   :  { %v2091_v17 = vpop.permute.xlu1 %2090 }
 0x55a   :  { %v2112_v18 = vsel %vm1038_vm1, %v2016_v62, %v2091_v17  ;;  %v2550_v17 = vld [vmem:[#allocation5 + $0x81] ss:$0 sm:$0xff] }
 0x55b   :  { %v2114_v7 = vsel %vm1403_vm3, %v2112_v18, %v2099_v15  ;;  %v57_v15 = vld [vmem:[#allocation5 + $0x78] sm:$0xff] }
 0x55c   :  { %v2117_v5 = vsel %vm2116_vm4, %v2114_v7, %v2107_v19  ;;  %v2802_v16 = vpack.c.bf16 %v57_v15, %v56_v33 }
 0x55d   :  { %2693 = vmatprep.mubr.msk.f32.mxu0 %vm72_vm0, %v2117_v5  ;;  %v2109_v21 = vpop.permute.xlu1 %2108 }
 0x55e   :  { %v2118_v63 = vsel %vm2116_vm4, %v2115_v20, %v2109_v21  ;;  %v2553_v21 = vld [vmem:[#allocation5 + $0x85] ss:$0 sm:$0xff] }
 0x55f   :  { %2694 = vmatmul.mubr.msk.f32.vlgmr.msra.gmra.mrb[6].mxu0 %vm72_vm0, %v2118_v63 }
 0x560   :  { %2793 = vmatpush3.bf16.msra.mxu0 %v2790_v38 }
 0x561   :  { %2795 = vmatprep.subr.bf16.mxu0 %v2794_v47 }
 0x564   :  { %2797 = vmatpush3.bf16.msra.mxu0 %v2794_v47 }
 0x565   :  { %2799 = vmatprep.subr.bf16.mxu0 %v2798_v10 }
 0x568   :  { %2801 = vmatpush3.bf16.msra.mxu0 %v2798_v10 }
 0x569   :  { %2803 = vmatprep.subr.bf16.mxu0 %v2802_v16 }
 0x56c   :  { %2805 = vmatpush3.bf16.msra.mxu0 %v2802_v16 }
 0x632   :  { %v2695_v6 = vpop.f32.mrb[6].mxu0 }
 0x633   :  { %v2217_v12 = vadd.f32 %v2695_v6, %v2545_v4  ;;  %v2211_v22 = vpop.f32.mrb[7].mxu0 }
 0x634   :  { %v2212_v24 = vadd.f32 %v2545_v4, %v2211_v22 }
 0x635   :  { %v2221_v28 = vadd.f32 %v2877_v25, %v2217_v12 }
 0x636   :  { %v2220_v37 = vadd.f32 %v2878_v30, %v2212_v24 }
 0x637   :  { %v2225_v29 = vsel %vm72_vm0, %v2221_v28, 0.0 }
 0x638   :  { %2226 = vadd.xlane.f32.xlu1 %v2225_v29  ;;  %v2222_v40 = vsel %vm72_vm0, %v2220_v37, 0.0 }
 0x639   :  { %2223 = vadd.xlane.f32.xlu0 %v2222_v40 }
 0x6c5   :  { %v2227_v41 = vpop.xlane.xlu1 %2226 }
 0x6c6   :  { %v2230_v42 = vmul.f32 0.03125, %v2227_v41  ;;  %v2224_v43 = vpop.xlane.xlu0 %2223 }
 0x6c7   :  { %v2229_v44 = vmul.f32 0.03125, %v2224_v43 }
 0x6c8   :  { %v2232_v46 = vsub.f32 %v2221_v28, %v2230_v42 }
 0x6c9   :  { %v2231_v48 = vsub.f32 %v2220_v37, %v2229_v44 }
 0x6ca   :  { %v2234_v39 = vmul.f32 %v2232_v46, %v2232_v46 }
 0x6cb   :  { %v2233_v13 = vmul.f32 %v2231_v48, %v2231_v48 }
 0x6cc   :  { %v2238_v27 = vsel %vm72_vm0, %v2234_v39, 0.0 }
 0x6cd   :  { %v2235_v11 = vsel %vm72_vm0, %v2233_v13, 0.0 }
 0x6ce   :  { %2236 = vadd.xlane.f32.xlu0 %v2235_v11 }
 0x6d2   :  { %2239 = vadd.xlane.f32.xlu0 %v2238_v27 }
 0x75b   :  { %v2237_v35 = vpop.xlane.xlu0 %2236 }
 0x75c   :  { %v2241_v0 = vmul.f32 0.03125, %v2237_v35 }
 0x75e   :  { %v2243_v1 = vadd.f32 1e-05, %v2241_v0 }
 0x75f   :  { %v2240_v3 = vpop.xlane.xlu0 %2239 }
 0x760   :  { %2869 = vrsqrt.f32 %v2243_v1  ;;  %v2242_v26 = vmul.f32 0.03125, %v2240_v3 }
 0x762   :  { %v2244_v36 = vadd.f32 1e-05, %v2242_v26 }
 0x764   :  { %2871 = vrsqrt.f32 %v2244_v36 }
 0x76a   :  { %v2870_v23 = vpop.eup %2869 }
 0x76b   :  { %v2247_v56 = vmul.f32 %v2870_v23, %v2231_v48 }
 0x76d   :  { %v2253_v58 = vmul.f32 %v2548_v55, %v2247_v56 }
 0x76e   :  { %v2872_v59 = vpop.eup %2871 }
 0x76f   :  { %v2248_v60 = vmul.f32 %v2872_v59, %v2232_v46  ;;  %v2259_v61 = vadd.f32 %v2549_v57, %v2253_v58 }
 0x771   :  { %v2254_v62 = vmul.f32 %v2548_v55, %v2248_v60  ;;  %2704 = vmatprep.mubr.msk.f32.mxu1 %vm72_vm0, %v2259_v61 }
 0x773   :  { %v2260_v14 = vadd.f32 %v2549_v57, %v2254_v62 }
 0x775   :  { %2705 = vmatmul.mubr.msk.f32.vlgmr.msra.gmra.mrb[12].mxu1 %vm72_vm0, %v2260_v14 }
 0x848   :  { %v2706_v18 = vpop.f32.mrb[12].mxu1 }
 0x849   :  { %v2343_v19 = vadd.f32 %v2706_v18, %v2550_v17  ;;  %v2337_v7 = vpop.f32.mrb[13].mxu1 }
 0x84a   :  { %v2338_v2 = vadd.f32 %v2550_v17, %v2337_v7 }
 0x84b   :  { %v2347_v20 = vmax.f32 %v2343_v19, 0.0 }
 0x84c   :  { %v2346_v5 = vmax.f32 %v2338_v2, 0.0 }
 0x84e   :  { %2723 = vmatprep.mubr.msk.f32.mxu0 %vm2352_vm5, %v2346_v5 }
 0x84f   :  { %2724 = vmatmul.mubr.msk.f32.vlgmr.msra.gmra.mrb[8].mxu0 %vm2352_vm5, %v2347_v20 }
 0x922   :  { %v2725_v63 = vpop.f32.mrb[8].mxu0 }
 0x923   :  { %v2431_v4 = vadd.f32 %v2725_v63, %v2553_v21  ;;  %v2425_v6 = vpop.f32.mrb[9].mxu0 }
 0x924   :  { %v2426_v12 = vadd.f32 %v2553_v21, %v2425_v6 }
 0x925   :  { %v2435_v22 = vadd.f32 %v2431_v4, %v2260_v14 }
 0x926   :  { %v2434_v24 = vadd.f32 %v2426_v12, %v2259_v61 }
 0x927   :  { %v2439_v25 = vsel %vm72_vm0, %v2435_v22, 0.0 }
 0x928   :  { %2440 = vadd.xlane.f32.xlu0 %v2439_v25  ;;  %v2436_v28 = vsel %vm72_vm0, %v2434_v24, 0.0 }
 0x929   :  { %2437 = vadd.xlane.f32.xlu1 %v2436_v28 }
 0x9b5   :  { %v2441_v30 = vpop.xlane.xlu0 %2440 }
 0x9b6   :  { %v2443_v37 = vmul.f32 0.03125, %v2441_v30  ;;  %v2438_v29 = vpop.xlane.xlu1 %2437 }
 0x9b7   :  { %v2442_v40 = vmul.f32 0.03125, %v2438_v29 }
 0x9b8   :  { %v2445_v41 = vsub.f32 %v2435_v22, %v2443_v37 }
 0x9b9   :  { %v2444_v42 = vsub.f32 %v2434_v24, %v2442_v40 }
 0x9ba   :  { %v2447_v43 = vmul.f32 %v2445_v41, %v2445_v41 }
 0x9bb   :  { %v2446_v44 = vmul.f32 %v2444_v42, %v2444_v42 }
 0x9bc   :  { %v2451_v46 = vsel %vm72_vm0, %v2447_v43, 0.0 }
 0x9bd   :  { %2452 = vadd.xlane.f32.xlu0 %v2451_v46  ;;  %v2448_v48 = vsel %vm72_vm0, %v2446_v44, 0.0 }
 0x9be   :  { %2449 = vadd.xlane.f32.xlu1 %v2448_v48 }
 0xa4a   :  { %v2453_v13 = vpop.xlane.xlu0 %2452 }
 0xa4b   :  { %v2455_v11 = vmul.f32 0.03125, %v2453_v13  ;;  %v2450_v39 = vpop.xlane.xlu1 %2449 }
 0xa4c   :  { %v2454_v27 = vmul.f32 0.03125, %v2450_v39 }
 0xa4d   :  { %v2457_v49 = vadd.f32 1e-05, %v2455_v11 }
 0xa4e   :  { %v2456_v50 = vadd.f32 1e-05, %v2454_v27 }
 0xa4f   :  { %2873 = vrsqrt.f32 %v2457_v49 }
 0xa50   :  { %2875 = vrsqrt.f32 %v2456_v50 }
 0xa59   :  { %v2874_v51 = vpop.eup %2873 }
 0xa5a   :  { %v2876_v45 = vpop.eup %2875  ;;  %v2461_v31 = vmul.f32 %v2874_v51, %v2445_v41 }
 0xa5b   :  { %v2460_v53 = vmul.f32 %v2876_v45, %v2444_v42 }
 0xa5c   :  { %v2467_v32 = vmul.f32 %v2556_v52, %v2461_v31 }
 0xa5d   :  { %v2466_v38 = vmul.f32 %v2556_v52, %v2460_v53 }
 0xa5e   :  { %v2473_v34 = vadd.f32 %v2557_v54, %v2467_v32 }
 0xa5f   :  { %v2472_v47 = vadd.f32 %v2557_v54, %v2466_v38 }
 0xa60   :  { %2475 = vst.msk [vmem:[#allocation7 + $0x8] sm:$0xff] %vm72_vm0, %v2473_v34 }
 0xa61   :  { %2474 = vst.msk [vmem:[#allocation7] sm:$0xff] %vm72_vm0, %v2472_v47 }
 0xa62   :  { %2934 = shalt.err (!%p2931_p6)
}
 0xa63   :  { %s2935_s26 = scalar_lea.hbm %s3385_s2, 256 }
 0xa64   :  { %p2936_p7 = scmp.ne.s32.totalorder %s3385_s2, %s2935_s26  ;;  %p2939_p8 = scmp.lt.u32.totalorder %s2935_s26, %s3385_s2 }
 0xa66   :  { %p2941_p9 = pnand %p2939_p8, %p2936_p7 }
 0xa68   :  { %2944 = shalt.err (!%p2941_p9)
}
 0xa69   :  { %2487 = dma.vmem_to_hbm [thread:$0]  %s2482_s22, 256, %s3385_s2, [#allocation4], %s2952_s19, %s2952_s19, %s2953_s20  }
 0xa6a   :  { %2949 = dma.done.wait [#allocation4], 256  }
 0xa6b   :  { %2950 = vsyncadd [#allocation4], 4294967040 }
 0xa6c   :  { %2491 = vsyncpa [#allocation3], 1 }
 0xa6d   :  { %2492 = vsyncpa [#allocation6], 1 }
 0xa6e   :  { %2493 = vsyncpa [#allocation4], 1 }

</bundles_post_ra>
